<compile_context>
chip_gen: v7x
topology: tpu7x:2x2x1
jax: 0.10.0
libtpu: 0.0.40
codegen_flags: <defaults>
</compile_context>

<pallas_src>
import jax
import jax.numpy as jnp
from jax import lax
from jax.experimental import pallas as pl
from jax.experimental.pallas import tpu as pltpu

ALPHA = 1.0        # importance weight in the decision logit
THRESHOLD = 0.2    # reuse threshold
NEG_INF = -1e9
EPS = 1e-6


def _round_up(x, m):
    return ((x + m - 1) // m) * m


def _reuse_kernel(pp_ref, hid_ref, q_ref, k_ref, v_ref,
                  imp_ref, cppnT_ref, cache_ref, mask_ref, w_ref, out_ref):
    D = pp_ref.shape[-1]
    TN = pp_ref.shape[-2]
    out_dtype = out_ref.dtype

    pp = pp_ref[0].astype(jnp.float32)        # (TN, D)  current pre-projection (CLS removed)
    imp = imp_ref[0]                          # (TN, 1)  precomputed importance (f32)
    mask = mask_ref[0]                        # (1, Mp)  1.0 where cached token valid
    cache = cache_ref[0]                      # (Mp, 5D) [cpp | chid | cq | ck | cv], model dtype
    cppn_t = cppnT_ref[0]                     # (D, Mp)  pre-normalized, pre-transposed, bf16

    # --- similarity module: cosine similarity (norm = None) -------------------
    # current-side normalization in f32 (VPU/EUP); matmul on the MXU with bf16
    # operands and f32 accumulation.  cached-side normalization hoisted to wrapper.
    pp_n = pp * lax.rsqrt(jnp.sum(pp * pp, axis=-1, keepdims=True) + EPS)
    sim = lax.dot_general(pp_n.astype(jnp.bfloat16), cppn_t,
                          (((1,), (0,)), ((), ())),
                          preferred_element_type=jnp.float32)           # (TN, Mp)

    # --- ref_mask application (similarity[~ref_mask] = -1e9) ------------------
    sim = jnp.where(mask > 0.0, sim, NEG_INF)

    # --- decision module -------------------------------------------------------
    Mp = sim.shape[-1]
    max_sim = jnp.max(sim, axis=-1, keepdims=True)                      # (TN, 1)
    col = lax.broadcasted_iota(jnp.int32, sim.shape, 1)                 # (TN, Mp)
    # first-occurrence argmax
    idx = jnp.min(jnp.where(sim >= max_sim, col, Mp), axis=-1, keepdims=True)
    reuse = (max_sim - ALPHA * imp - THRESHOLD) > 0.0                   # (TN, 1) bool

    # --- fused gather of most-similar cached states (one wide MXU matmul) -----
    # one-hot operand in the model dtype -> result is exact
    onehot = (col == idx).astype(cache.dtype)                           # (TN, Mp)
    ms = jnp.dot(onehot, cache, preferred_element_type=jnp.float32)     # (TN, 5D) f32
    ms_pp = ms[:, :D]                                                   # (TN, D)

    # --- fused restoration: delta @ [Wh|Wq|Wk|Wv] (bf16 operands, f32 accum) ---
    delta = (pp - ms_pp).astype(jnp.bfloat16)                           # (TN, D)
    restored = ms[:, D:] + jnp.dot(delta, w_ref[...],
                                   preferred_element_type=jnp.float32)  # (TN, 4D)

    # --- gating module: hard select, stored directly into aligned output slices
    out_ref[0, :, 0:D] = jnp.where(reuse, ms_pp, pp).astype(out_dtype)
    for i, cref in enumerate((hid_ref, q_ref, k_ref, v_ref)):
        sel = jnp.where(reuse,
                        restored[:, i * D:(i + 1) * D].astype(out_dtype),
                        cref[0].astype(out_dtype))
        out_ref[0, :, (i + 1) * D:(i + 2) * D] = sel

    # reuse flag broadcast across the trailing lane chunk (keeps the store wide)
    flag_w = out_ref.shape[-1] - 5 * D
    out_ref[0, :, 5 * D:] = jnp.broadcast_to(reuse.astype(out_dtype), (TN, flag_w))


def reuse_module_forward(cached_states, pre_proj, hidden_states, query_states,
                         key_states, value_states, attn_weights, ref_mask, weights,
                         *, token_tile=256, vmem_limit_bytes=40 * 1024 * 1024):
    # token_tile=256 targets the 256-row MXU on v6e/v7x; use 128 on v5e.
    # vmem_limit_bytes=40 MiB leaves headroom on v7x (64 MiB/TC); raise on v5e/v6e
    # for f32 models with token_tile=256 if needed.
    B, N, D = hidden_states.shape
    cpp, chid, cq, ck, cv = cached_states
    M = cpp.shape[1]
    R = M // N
    wh, wq, wk, wv = weights
    dtype = hidden_states.dtype
    itemsize = jnp.dtype(dtype).itemsize

    # skip_cls = True : strip CLS token (glue)
    cls = [x[:, :1] for x in (pre_proj, hidden_states, query_states, key_states, value_states)]
    toks = [x[:, 1:] for x in (pre_proj, hidden_states, query_states, key_states, value_states)]
    Nl = N - 1

    # importance module in XLA (fused for free): mean over heads & keys, drop CLS row
    imp = jnp.mean(attn_weights, axis=(1, 3))[:, 1:, None].astype(jnp.float32)   # (B, Nl, 1)

    # token-dim tiling (bounds VMEM regardless of sequence length)
    TN = min(token_tile, _round_up(Nl, 8))
    Nlp = _round_up(Nl, TN)
    T = Nlp // TN
    if Nlp > Nl:
        toks = [jnp.pad(x, ((0, 0), (0, Nlp - Nl), (0, 0))) for x in toks]
        imp = jnp.pad(imp, ((0, 0), (0, Nlp - Nl), (0, 0)))

    # stack caches into one (B, Mp, 5D) slab (model dtype); pad cached dim to lanes
    Mp = _round_up(M, 128)
    cache_slab = jnp.concatenate([cpp, chid, cq, ck, cv], axis=-1)                # (B, M, 5D)
    if Mp > M:
        cache_slab = jnp.pad(cache_slab, ((0, 0), (0, Mp - M), (0, 0)))

    # hoisted cached-side normalization: pre-normalized, pre-transposed, bf16
    cpp32 = cpp.astype(jnp.float32)
    cppn = cpp32 * lax.rsqrt(jnp.sum(cpp32 * cpp32, axis=-1, keepdims=True) + EPS)
    cppn_t = jnp.swapaxes(cppn, 1, 2)                                             # (B, D, M)
    if Mp > M:
        cppn_t = jnp.pad(cppn_t, ((0, 0), (0, 0), (0, Mp - M)))
    cppn_t = cppn_t.astype(jnp.bfloat16)                                          # (B, D, Mp)

    # expand ref_mask (B, R) -> per-cached-token mask, pad with 0 (invalid)
    mask_exp = jnp.repeat(ref_mask[:, :R].astype(jnp.float32), N, axis=1)          # (B, M)
    mask_exp = jnp.pad(mask_exp, ((0, 0), (0, Mp - M))).reshape(B, 1, Mp)

    # fuse restoration weights into one (D, 4D) bf16 block (grid-constant operand)
    w_all = jnp.concatenate([wh, wq, wk, wv], axis=-1).astype(jnp.bfloat16)

    # packed lane-dense output slab (model dtype): [pp | hid | q | k | v | flag-chunk]
    SLAB = _round_up(5 * D + 1, 128)

    tok_spec = pl.BlockSpec((1, TN, D), lambda b, t: (b, t, 0))
    imp_spec = pl.BlockSpec((1, TN, 1), lambda b, t: (b, t, 0))
    cppn_spec = pl.BlockSpec((1, D, Mp), lambda b, t: (b, 0, 0))        # constant in t
    cache_spec = pl.BlockSpec((1, Mp, 5 * D), lambda b, t: (b, 0, 0))   # constant in t
    mask_spec = pl.BlockSpec((1, 1, Mp), lambda b, t: (b, 0, 0))
    w_spec = pl.BlockSpec((D, 4 * D), lambda b, t: (0, 0))              # grid-constant
    out_spec = pl.BlockSpec((1, TN, SLAB), lambda b, t: (b, t, 0))

    flops = B * T * (2 * TN * D * Mp          # similarity matmul (bf16)
                     + 2 * TN * Mp * 5 * D    # fused one-hot gather
                     + 2 * TN * D * 4 * D)    # fused restoration (bf16)
    bytes_accessed = int(
        5 * B * Nlp * D * itemsize            # token inputs
        + B * Nlp * 4                         # importance
        + B * D * Mp * 2                      # pre-normalized cached pre-proj (bf16)
        + B * Mp * 5 * D * itemsize           # cache slab (read once per batch)
        + B * Mp * 4                          # mask
        + D * 4 * D * 2                       # weights (bf16)
        + B * Nlp * SLAB * itemsize)          # packed output (model dtype)
    cost = pl.CostEstimate(flops=int(flops),
                           transcendentals=int(B * Nlp),
                           bytes_accessed=bytes_accessed)

    out = pl.pallas_call(
        _reuse_kernel,
        out_shape=jax.ShapeDtypeStruct((B, Nlp, SLAB), dtype),
        grid=(B, T),
        in_specs=[tok_spec] * 5 + [imp_spec, cppn_spec, cache_spec, mask_spec, w_spec],
        out_specs=out_spec,
        compiler_params=pltpu.CompilerParams(
            dimension_semantics=("parallel", "parallel"),
            vmem_limit_bytes=vmem_limit_bytes),
        cost_estimate=cost,
    )(*toks, imp, cppn_t, cache_slab, mask_exp, w_all)

    # unpack slab (glue)
    out = out[:, :Nl]
    opp = out[..., 0 * D:1 * D]
    oh = out[..., 1 * D:2 * D]
    oq = out[..., 2 * D:3 * D]
    ok = out[..., 3 * D:4 * D]
    ov = out[..., 4 * D:5 * D]
    reuse_map = out[..., 5 * D].astype(jnp.float32) > 0.5               # (B, Nl) bool

    out_pp = jnp.concatenate([cls[0], opp], axis=1)
    out_h = jnp.concatenate([cls[1], oh], axis=1)
    out_q = jnp.concatenate([cls[2], oq], axis=1)
    out_k = jnp.concatenate([cls[3], ok], axis=1)
    out_v = jnp.concatenate([cls[4], ov], axis=1)
    reuse_map = jnp.concatenate([jnp.zeros((B, 1), dtype=jnp.bool_), reuse_map], axis=1)
    return reuse_map, out_pp, out_h, out_q, out_k, out_v


def _reference_forward(cached_states, pre_proj, hidden_states, query_states,
                       key_states, value_states, attn_weights, ref_mask, weights):
    """Pure-JAX reference with identical semantics.

    The similarity matmul mirrors the kernel's bf16-operand / f32-accumulation MXU
    path (review-endorsed precision tradeoff) so the discrete reuse decision and
    argmax index compare exactly; everything else stays in f32.
    """
    B, N, D = hidden_states.shape
    cpp, chid, cq, ck, cv = cached_states
    M = cpp.shape[1]
    wh, wq, wk, wv = weights

    pp_ = pre_proj[:, 1:]
    hid_ = hidden_states[:, 1:]
    q_ = query_states[:, 1:]
    k_ = key_states[:, 1:]
    v_ = value_states[:, 1:]
    Nl = N - 1

    ppn = pp_ * lax.rsqrt(jnp.sum(pp_ * pp_, -1, keepdims=True) + EPS)
    cppn = cpp * lax.rsqrt(jnp.sum(cpp * cpp, -1, keepdims=True) + EPS)
    sim = jnp.einsum('bnd,bmd->bnm',
                     ppn.astype(jnp.bfloat16), cppn.astype(jnp.bfloat16),
                     preferred_element_type=jnp.float32)
    mask_exp = jnp.repeat(ref_mask.astype(jnp.float32), N, axis=1)[:, None, :]
    sim = jnp.where(mask_exp > 0.0, sim, NEG_INF)

    imp = jnp.mean(attn_weights, axis=(1, 3))[:, 1:, None]

    max_sim = jnp.max(sim, -1, keepdims=True)
    col = jnp.arange(M)[None, None, :]
    idx = jnp.min(jnp.where(sim >= max_sim, col, M), -1, keepdims=True)
    logit = max_sim - ALPHA * imp - THRESHOLD
    reuse = logit > 0.0

    def gath(c):
        return jnp.take_along_axis(c, jnp.broadcast_to(idx, (B, Nl, D)), axis=1)

    ms_pp, ms_h, ms_q, ms_k, ms_v = gath(cpp), gath(chid), gath(cq), gath(ck), gath(cv)
    delta = pp_ - ms_pp
    r_h, r_q, r_k, r_v = ms_h + delta @ wh, ms_q + delta @ wq, ms_k + delta @ wk, ms_v + delta @ wv

    out_pp = jnp.where(reuse, ms_pp, pp_)
    out_h = jnp.where(reuse, r_h, hid_)
    out_q = jnp.where(reuse, r_q, q_)
    out_k = jnp.where(reuse, r_k, k_)
    out_v = jnp.where(reuse, r_v, v_)

    reuse_map = jnp.concatenate([jnp.zeros((B, 1), dtype=jnp.bool_), reuse[..., 0]], axis=1)
    cat = lambda cls, x: jnp.concatenate([cls, x], axis=1)
    return (reuse_map,
            cat(pre_proj[:, :1], out_pp), cat(hidden_states[:, :1], out_h),
            cat(query_states[:, :1], out_q), cat(key_states[:, :1], out_k),
            cat(value_states[:, :1], out_v))


if __name__ == "__main__":
    B, N, D, H, R = 2, 9, 32, 4, 2   # N tokens include CLS; M = R*N cached tokens
    M = R * N

    key = jax.random.PRNGKey(0)
    ks = jax.random.split(key, 16)
    pre_proj = jax.random.normal(ks[0], (B, N, D), jnp.float32)
    hidden_states = jax.random.normal(ks[1], (B, N, D), jnp.float32)
    query_states = jax.random.normal(ks[2], (B, N, D), jnp.float32)
    key_states = jax.random.normal(ks[3], (B, N, D), jnp.float32)
    value_states = jax.random.normal(ks[4], (B, N, D), jnp.float32)

    cached_states = (
        jax.random.normal(ks[5], (B, M, D), jnp.float32),
        jax.random.normal(ks[6], (B, M, D), jnp.float32),
        jax.random.normal(ks[7], (B, M, D), jnp.float32),
        jax.random.normal(ks[8], (B, M, D), jnp.float32),
        jax.random.normal(ks[9], (B, M, D), jnp.float32),
    )

    attn_weights = jax.nn.softmax(jax.random.normal(ks[10], (B, H, N, N), jnp.float32), axis=-1)
    ref_mask = jnp.array([[True, True], [True, False]])   # (B, R) valid-frame mask

    # deterministic restoration weights (synthetic params)
    weights = tuple(0.05 * jax.random.normal(ks[11 + i], (D, D), jnp.float32) for i in range(4))

    # TODO(synk): soft/Gumbel gating (hard=False, tau) is not implemented; hard gate only.
    outs = reuse_module_forward(cached_states, pre_proj, hidden_states, query_states,
                                key_states, value_states, attn_weights, ref_mask, weights)
    outs = jax.block_until_ready(outs)

    refs = _reference_forward(cached_states, pre_proj, hidden_states, query_states,
                              key_states, value_states, attn_weights, ref_mask, weights)

    assert bool(jnp.all(outs[0] == refs[0])), "reuse_map mismatch"
    for o, r in zip(outs[1:], refs[1:]):
        # bf16 operands in the restoration matmul -> ~1e-3 abs error vs f32 reference
        assert jnp.allclose(o, r, atol=1e-2, rtol=1e-2), "state mismatch"

    print("KERNEL_OK")
</pallas_src>

<mosaic_0001>
module attributes {stable_mosaic.version = 11 : i64} {
  func.func @_reuse_kernel(%arg0: i32, %arg1: i32, %arg2: memref<1x8x32xf32, #tpu.memory_space<vmem>>, %arg3: memref<1x8x32xf32, #tpu.memory_space<vmem>>, %arg4: memref<1x8x32xf32, #tpu.memory_space<vmem>>, %arg5: memref<1x8x32xf32, #tpu.memory_space<vmem>>, %arg6: memref<1x8x32xf32, #tpu.memory_space<vmem>>, %arg7: memref<1x8x1xf32, #tpu.memory_space<vmem>>, %arg8: memref<1x32x128xbf16, #tpu.memory_space<vmem>>, %arg9: memref<1x128x160xf32, #tpu.memory_space<vmem>>, %arg10: memref<1x1x128xf32, #tpu.memory_space<vmem>>, %arg11: memref<32x128xbf16, #tpu.memory_space<vmem>>, %arg12: memref<1x8x256xf32, #tpu.memory_space<vmem>>) attributes {dimension_semantics = [#tpu.dimension_semantics<parallel>, #tpu.dimension_semantics<parallel>], iteration_bounds = array<i64: 2, 1>, scalar_prefetch = 0 : i64, scratch_operands = 0 : i64, tpu.core_type = #tpu.core_type<tc>, window_params = [{transform_indices = @transform_0, window_bounds = array<i64: 1, 8, 32>}, {transform_indices = @transform_1, window_bounds = array<i64: 1, 8, 32>}, {transform_indices = @transform_2, window_bounds = array<i64: 1, 8, 32>}, {transform_indices = @transform_3, window_bounds = array<i64: 1, 8, 32>}, {transform_indices = @transform_4, window_bounds = array<i64: 1, 8, 32>}, {transform_indices = @transform_5, window_bounds = array<i64: 1, 8, 1>}, {transform_indices = @transform_6, window_bounds = array<i64: 1, 32, 128>}, {transform_indices = @transform_7, window_bounds = array<i64: 1, 128, 160>}, {transform_indices = @transform_8, window_bounds = array<i64: 1, 1, 128>}, {pipeline_mode = #tpu.pipeline_mode<synchronous>, transform_indices = @transform_9, window_bounds = array<i64: 32, 128>}, {transform_indices = @transform_10, window_bounds = array<i64: 1, 8, 256>}]} {
    %c0 = arith.constant 0 : index
    %c0_0 = arith.constant 0 : index
    %c0_1 = arith.constant 0 : index
    %0 = vector.load %arg2[%c0, %c0_0, %c0_1] : memref<1x8x32xf32, #tpu.memory_space<vmem>>, vector<1x8x32xf32>
    %1 = vector.shape_cast %0 : vector<1x8x32xf32> to vector<8x32xf32>
    %c0_2 = arith.constant 0 : index
    %c0_3 = arith.constant 0 : index
    %c0_4 = arith.constant 0 : index
    %2 = vector.load %arg7[%c0_2, %c0_3, %c0_4] : memref<1x8x1xf32, #tpu.memory_space<vmem>>, vector<1x8x1xf32>
    %3 = vector.shape_cast %2 : vector<1x8x1xf32> to vector<8x1xf32>
    %c0_5 = arith.constant 0 : index
    %c0_6 = arith.constant 0 : index
    %c0_7 = arith.constant 0 : index
    %4 = vector.load %arg10[%c0_5, %c0_6, %c0_7] : memref<1x1x128xf32, #tpu.memory_space<vmem>>, vector<1x1x128xf32>
    %5 = vector.shape_cast %4 : vector<1x1x128xf32> to vector<1x128xf32>
    %c0_8 = arith.constant 0 : index
    %c0_9 = arith.constant 0 : index
    %c0_10 = arith.constant 0 : index
    %6 = vector.load %arg9[%c0_8, %c0_9, %c0_10] : memref<1x128x160xf32, #tpu.memory_space<vmem>>, vector<1x128x160xf32>
    %7 = vector.shape_cast %6 : vector<1x128x160xf32> to vector<128x160xf32>
    %c0_11 = arith.constant 0 : index
    %c0_12 = arith.constant 0 : index
    %c0_13 = arith.constant 0 : index
    %8 = vector.load %arg8[%c0_11, %c0_12, %c0_13] : memref<1x32x128xbf16, #tpu.memory_space<vmem>>, vector<1x32x128xbf16>
    %9 = vector.shape_cast %8 : vector<1x32x128xbf16> to vector<32x128xbf16>
    %10 = arith.mulf %1, %1 : vector<8x32xf32>
    %cst = arith.constant dense<0.000000e+00> : vector<8xf32>
    %11 = vector.multi_reduction <add>, %10, %cst [1] : vector<8x32xf32> to vector<8xf32>
    %12 = vector.shape_cast %11 : vector<8xf32> to vector<8x1xf32>
    %cst_14 = arith.constant 9.99999997E-7 : f32
    %13 = vector.broadcast %cst_14 : f32 to vector<8x1xf32>
    %14 = arith.addf %12, %13 : vector<8x1xf32>
    %15 = math.rsqrt %14 : vector<8x1xf32>
    %16 = vector.broadcast %15 : vector<8x1xf32> to vector<8x32xf32>
    %17 = arith.mulf %1, %16 : vector<8x32xf32>
    %18 = arith.truncf %17 : vector<8x32xf32> to vector<8x32xbf16>
    %cst_15 = arith.constant dense<0.000000e+00> : vector<8x128xf32>
    %19 = tpu.matmul %18, %9, %cst_15 {dimension_numbers = #tpu.dot_dimension_numbers<[1], [0], [0], [1], [0, 0, 1, 1], [], []>} : vector<8x32xbf16>, vector<32x128xbf16>, vector<8x128xf32> -> vector<8x128xf32>
    %cst_16 = arith.constant 0.000000e+00 : f32
    %20 = vector.broadcast %cst_16 : f32 to vector<1x128xf32>
    %21 = arith.cmpf ogt, %5, %20 : vector<1x128xf32>
    %cst_17 = arith.constant -1.000000e+09 : f32
    %22 = vector.shape_cast %21 : vector<1x128xi1> to vector<1x128xi1>
    %23 = vector.broadcast %22 : vector<1x128xi1> to vector<8x128xi1>
    %24 = vector.broadcast %cst_17 : f32 to vector<8x128xf32>
    %25 = arith.select %23, %19, %24 : vector<8x128xi1>, vector<8x128xf32>
    %cst_18 = arith.constant dense<0xFF800000> : vector<8xf32>
    %26 = vector.multi_reduction <maximumf>, %25, %cst_18 [1] : vector<8x128xf32> to vector<8xf32>
    %27 = vector.shape_cast %26 : vector<8xf32> to vector<8x1xf32>
    %28 = tpu.iota {dimensions = array<i32: 1>} : vector<8x128xi32>
    %29 = vector.broadcast %27 : vector<8x1xf32> to vector<8x128xf32>
    %30 = arith.cmpf oge, %25, %29 : vector<8x128xf32>
    %c128_i32 = arith.constant 128 : i32
    %31 = vector.broadcast %c128_i32 : i32 to vector<8x128xi32>
    %32 = arith.select %30, %28, %31 : vector<8x128xi1>, vector<8x128xi32>
    %cst_19 = arith.constant dense<2147483647> : vector<8xi32>
    %33 = vector.multi_reduction <minsi>, %32, %cst_19 [1] : vector<8x128xi32> to vector<8xi32>
    %34 = vector.shape_cast %33 : vector<8xi32> to vector<8x1xi32>
    %cst_20 = arith.constant 1.000000e+00 : f32
    %35 = vector.broadcast %cst_20 : f32 to vector<8x1xf32>
    %36 = arith.mulf %35, %3 : vector<8x1xf32>
    %37 = arith.subf %27, %36 : vector<8x1xf32>
    %cst_21 = arith.constant 2.000000e-01 : f32
    %38 = vector.broadcast %cst_21 : f32 to vector<8x1xf32>
    %39 = arith.subf %37, %38 : vector<8x1xf32>
    %cst_22 = arith.constant 0.000000e+00 : f32
    %40 = vector.broadcast %cst_22 : f32 to vector<8x1xf32>
    %41 = arith.cmpf ogt, %39, %40 : vector<8x1xf32>
    %42 = vector.broadcast %34 : vector<8x1xi32> to vector<8x128xi32>
    %43 = arith.cmpi eq, %28, %42 : vector<8x128xi32>
    %44 = arith.extui %43 : vector<8x128xi1> to vector<8x128xi32>
    %45 = arith.sitofp %44 : vector<8x128xi32> to vector<8x128xf32>
    %cst_23 = arith.constant dense<0.000000e+00> : vector<8x160xf32>
    %46 = tpu.matmul %45, %7, %cst_23 {dimension_numbers = #tpu.dot_dimension_numbers<[1], [0], [0], [1], [0, 0, 1, 1], [], []>} : vector<8x128xf32>, vector<128x160xf32>, vector<8x160xf32> -> vector<8x160xf32>
    %47 = vector.extract_strided_slice %46 {offsets = [0, 0], sizes = [8, 32], strides = [1, 1]} : vector<8x160xf32> to vector<8x32xf32>
    %48 = arith.subf %1, %47 : vector<8x32xf32>
    %49 = arith.truncf %48 : vector<8x32xf32> to vector<8x32xbf16>
    %50 = vector.extract_strided_slice %46 {offsets = [0, 32], sizes = [8, 128], strides = [1, 1]} : vector<8x160xf32> to vector<8x128xf32>
    %c0_24 = arith.constant 0 : index
    %c0_25 = arith.constant 0 : index
    %51 = vector.load %arg11[%c0_24, %c0_25] : memref<32x128xbf16, #tpu.memory_space<vmem>>, vector<32x128xbf16>
    %cst_26 = arith.constant dense<0.000000e+00> : vector<8x128xf32>
    %52 = tpu.matmul %49, %51, %cst_26 {dimension_numbers = #tpu.dot_dimension_numbers<[1], [0], [0], [1], [0, 0, 1, 1], [], []>} : vector<8x32xbf16>, vector<32x128xbf16>, vector<8x128xf32> -> vector<8x128xf32>
    %53 = arith.addf %50, %52 : vector<8x128xf32>
    %54 = vector.shape_cast %41 : vector<8x1xi1> to vector<8x1xi1>
    %55 = vector.broadcast %54 : vector<8x1xi1> to vector<8x32xi1>
    %56 = arith.select %55, %47, %1 : vector<8x32xi1>, vector<8x32xf32>
    %c0_27 = arith.constant 0 : index
    %c0_28 = arith.constant 0 : index
    %c0_29 = arith.constant 0 : index
    %57 = vector.load %arg12[%c0_27, %c0_28, %c0_29] : memref<1x8x256xf32, #tpu.memory_space<vmem>>, vector<1x8x32xf32>
    %58 = vector.shape_cast %57 : vector<1x8x32xf32> to vector<8x32xf32>
    %59 = vector.shape_cast %56 : vector<8x32xf32> to vector<1x8x32xf32>
    tpu.vector_store %arg12[%c0_27, %c0_28, %c0_29], %59 {strides = array<i32>} : memref<1x8x256xf32, #tpu.memory_space<vmem>>, vector<1x8x32xf32>,
    %60 = vector.extract_strided_slice %53 {offsets = [0, 0], sizes = [8, 32], strides = [1, 1]} : vector<8x128xf32> to vector<8x32xf32>
    %c0_30 = arith.constant 0 : index
    %c0_31 = arith.constant 0 : index
    %c0_32 = arith.constant 0 : index
    %61 = vector.load %arg3[%c0_30, %c0_31, %c0_32] : memref<1x8x32xf32, #tpu.memory_space<vmem>>, vector<1x8x32xf32>
    %62 = vector.shape_cast %61 : vector<1x8x32xf32> to vector<8x32xf32>
    %63 = vector.shape_cast %41 : vector<8x1xi1> to vector<8x1xi1>
    %64 = vector.broadcast %63 : vector<8x1xi1> to vector<8x32xi1>
    %65 = arith.select %64, %60, %62 : vector<8x32xi1>, vector<8x32xf32>
    %c0_33 = arith.constant 0 : index
    %c0_34 = arith.constant 0 : index
    %c32 = arith.constant 32 : index
    %66 = vector.load %arg12[%c0_33, %c0_34, %c32] : memref<1x8x256xf32, #tpu.memory_space<vmem>>, vector<1x8x32xf32>
    %67 = vector.shape_cast %66 : vector<1x8x32xf32> to vector<8x32xf32>
    %68 = vector.shape_cast %65 : vector<8x32xf32> to vector<1x8x32xf32>
    tpu.vector_store %arg12[%c0_33, %c0_34, %c32], %68 {strides = array<i32>} : memref<1x8x256xf32, #tpu.memory_space<vmem>>, vector<1x8x32xf32>,
    %69 = vector.extract_strided_slice %53 {offsets = [0, 32], sizes = [8, 32], strides = [1, 1]} : vector<8x128xf32> to vector<8x32xf32>
    %c0_35 = arith.constant 0 : index
    %c0_36 = arith.constant 0 : index
    %c0_37 = arith.constant 0 : index
    %70 = vector.load %arg4[%c0_35, %c0_36, %c0_37] : memref<1x8x32xf32, #tpu.memory_space<vmem>>, vector<1x8x32xf32>
    %71 = vector.shape_cast %70 : vector<1x8x32xf32> to vector<8x32xf32>
    %72 = vector.shape_cast %41 : vector<8x1xi1> to vector<8x1xi1>
    %73 = vector.broadcast %72 : vector<8x1xi1> to vector<8x32xi1>
    %74 = arith.select %73, %69, %71 : vector<8x32xi1>, vector<8x32xf32>
    %c0_38 = arith.constant 0 : index
    %c0_39 = arith.constant 0 : index
    %c64 = arith.constant 64 : index
    %75 = vector.load %arg12[%c0_38, %c0_39, %c64] : memref<1x8x256xf32, #tpu.memory_space<vmem>>, vector<1x8x32xf32>
    %76 = vector.shape_cast %75 : vector<1x8x32xf32> to vector<8x32xf32>
    %77 = vector.shape_cast %74 : vector<8x32xf32> to vector<1x8x32xf32>
    tpu.vector_store %arg12[%c0_38, %c0_39, %c64], %77 {strides = array<i32>} : memref<1x8x256xf32, #tpu.memory_space<vmem>>, vector<1x8x32xf32>,
    %78 = vector.extract_strided_slice %53 {offsets = [0, 64], sizes = [8, 32], strides = [1, 1]} : vector<8x128xf32> to vector<8x32xf32>
    %c0_40 = arith.constant 0 : index
    %c0_41 = arith.constant 0 : index
    %c0_42 = arith.constant 0 : index
    %79 = vector.load %arg5[%c0_40, %c0_41, %c0_42] : memref<1x8x32xf32, #tpu.memory_space<vmem>>, vector<1x8x32xf32>
    %80 = vector.shape_cast %79 : vector<1x8x32xf32> to vector<8x32xf32>
    %81 = vector.shape_cast %41 : vector<8x1xi1> to vector<8x1xi1>
    %82 = vector.broadcast %81 : vector<8x1xi1> to vector<8x32xi1>
    %83 = arith.select %82, %78, %80 : vector<8x32xi1>, vector<8x32xf32>
    %c0_43 = arith.constant 0 : index
    %c0_44 = arith.constant 0 : index
    %c96 = arith.constant 96 : index
    %84 = vector.load %arg12[%c0_43, %c0_44, %c96] : memref<1x8x256xf32, #tpu.memory_space<vmem>>, vector<1x8x32xf32>
    %85 = vector.shape_cast %84 : vector<1x8x32xf32> to vector<8x32xf32>
    %86 = vector.shape_cast %83 : vector<8x32xf32> to vector<1x8x32xf32>
    tpu.vector_store %arg12[%c0_43, %c0_44, %c96], %86 {strides = array<i32>} : memref<1x8x256xf32, #tpu.memory_space<vmem>>, vector<1x8x32xf32>,
    %87 = vector.extract_strided_slice %53 {offsets = [0, 96], sizes = [8, 32], strides = [1, 1]} : vector<8x128xf32> to vector<8x32xf32>
    %c0_45 = arith.constant 0 : index
    %c0_46 = arith.constant 0 : index
    %c0_47 = arith.constant 0 : index
    %88 = vector.load %arg6[%c0_45, %c0_46, %c0_47] : memref<1x8x32xf32, #tpu.memory_space<vmem>>, vector<1x8x32xf32>
    %89 = vector.shape_cast %88 : vector<1x8x32xf32> to vector<8x32xf32>
    %90 = vector.shape_cast %41 : vector<8x1xi1> to vector<8x1xi1>
    %91 = vector.broadcast %90 : vector<8x1xi1> to vector<8x32xi1>
    %92 = arith.select %91, %87, %89 : vector<8x32xi1>, vector<8x32xf32>
    %c0_48 = arith.constant 0 : index
    %c0_49 = arith.constant 0 : index
    %c128 = arith.constant 128 : index
    %93 = vector.load %arg12[%c0_48, %c0_49, %c128] : memref<1x8x256xf32, #tpu.memory_space<vmem>>, vector<1x8x32xf32>
    %94 = vector.shape_cast %93 : vector<1x8x32xf32> to vector<8x32xf32>
    %95 = vector.shape_cast %92 : vector<8x32xf32> to vector<1x8x32xf32>
    tpu.vector_store %arg12[%c0_48, %c0_49, %c128], %95 {strides = array<i32>} : memref<1x8x256xf32, #tpu.memory_space<vmem>>, vector<1x8x32xf32>,
    %96 = arith.extui %41 : vector<8x1xi1> to vector<8x1xi32>
    %97 = arith.sitofp %96 : vector<8x1xi32> to vector<8x1xf32>
    %98 = vector.shape_cast %97 : vector<8x1xf32> to vector<8x1xf32>
    %99 = vector.broadcast %98 : vector<8x1xf32> to vector<8x96xf32>
    %c0_50 = arith.constant 0 : index
    %c0_51 = arith.constant 0 : index
    %c160 = arith.constant 160 : index
    %100 = vector.load %arg12[%c0_50, %c0_51, %c160] : memref<1x8x256xf32, #tpu.memory_space<vmem>>, vector<1x8x96xf32>
    %101 = vector.shape_cast %100 : vector<1x8x96xf32> to vector<8x96xf32>
    %102 = vector.shape_cast %99 : vector<8x96xf32> to vector<1x8x96xf32>
    tpu.vector_store %arg12[%c0_50, %c0_51, %c160], %102 {strides = array<i32>} : memref<1x8x256xf32, #tpu.memory_space<vmem>>, vector<1x8x96xf32>,
    return
  }
  func.func @transform_0(%arg0: i32, %arg1: i32) -> (i32, i32, i32) {
    %c0_i32 = arith.constant 0 : i32
    %c0_i32_0 = arith.constant 0 : i32
    return %arg0, %arg1, %c0_i32 : i32, i32, i32
  }
  func.func @transform_1(%arg0: i32, %arg1: i32) -> (i32, i32, i32) {
    %c0_i32 = arith.constant 0 : i32
    %c0_i32_0 = arith.constant 0 : i32
    return %arg0, %arg1, %c0_i32 : i32, i32, i32
  }
  func.func @transform_2(%arg0: i32, %arg1: i32) -> (i32, i32, i32) {
    %c0_i32 = arith.constant 0 : i32
    %c0_i32_0 = arith.constant 0 : i32
    return %arg0, %arg1, %c0_i32 : i32, i32, i32
  }
  func.func @transform_3(%arg0: i32, %arg1: i32) -> (i32, i32, i32) {
    %c0_i32 = arith.constant 0 : i32
    %c0_i32_0 = arith.constant 0 : i32
    return %arg0, %arg1, %c0_i32 : i32, i32, i32
  }
  func.func @transform_4(%arg0: i32, %arg1: i32) -> (i32, i32, i32) {
    %c0_i32 = arith.constant 0 : i32
    %c0_i32_0 = arith.constant 0 : i32
    return %arg0, %arg1, %c0_i32 : i32, i32, i32
  }
  func.func @transform_5(%arg0: i32, %arg1: i32) -> (i32, i32, i32) {
    %c0_i32 = arith.constant 0 : i32
    %c0_i32_0 = arith.constant 0 : i32
    return %arg0, %arg1, %c0_i32 : i32, i32, i32
  }
  func.func @transform_6(%arg0: i32, %arg1: i32) -> (i32, i32, i32) {
    %c0_i32 = arith.constant 0 : i32
    %c0_i32_0 = arith.constant 0 : i32
    %c0_i32_1 = arith.constant 0 : i32
    return %arg0, %c0_i32, %c0_i32_0 : i32, i32, i32
  }
  func.func @transform_7(%arg0: i32, %arg1: i32) -> (i32, i32, i32) {
    %c0_i32 = arith.constant 0 : i32
    %c0_i32_0 = arith.constant 0 : i32
    %c0_i32_1 = arith.constant 0 : i32
    return %arg0, %c0_i32, %c0_i32_0 : i32, i32, i32
  }
  func.func @transform_8(%arg0: i32, %arg1: i32) -> (i32, i32, i32) {
    %c0_i32 = arith.constant 0 : i32
    %c0_i32_0 = arith.constant 0 : i32
    %c0_i32_1 = arith.constant 0 : i32
    return %arg0, %c0_i32, %c0_i32_0 : i32, i32, i32
  }
  func.func @transform_9(%arg0: i32, %arg1: i32) -> (i32, i32) {
    %c0_i32 = arith.constant 0 : i32
    %c0_i32_0 = arith.constant 0 : i32
    %c0_i32_1 = arith.constant 0 : i32
    return %c0_i32, %c0_i32_0 : i32, i32
  }
  func.func @transform_10(%arg0: i32, %arg1: i32) -> (i32, i32, i32) {
    %c0_i32 = arith.constant 0 : i32
    %c0_i32_0 = arith.constant 0 : i32
    return %arg0, %arg1, %c0_i32 : i32, i32, i32
  }
}

</mosaic_0001>

<bundles_post_ra>
// kernel: tpu_custom_call.1
= control target key start
LH: loop header
LB: loop body
LE: loop exit
PB: predicated region body
PF: predicated region fallthrough
CT: control target
= control target key end

     0   :  { %s1640_s0 = inlined_call_operand.vmem [shape: f32[2,8,32], index: 0, kind: input, shape index: {}]   ;;  %s1641_s1 = inlined_call_operand.vmem [shape: f32[2,8,32], index: 1, kind: input, shape index: {}]   ;;  %s1642_s2 = inlined_call_operand.vmem [shape: f32[2,8,32], index: 2, kind: input, shape index: {}]   ;;  %s1643_s3 = inlined_call_operand.vmem [shape: f32[2,8,32], index: 3, kind: input, shape index: {}]   ;;  %s1644_s4 = inlined_call_operand.vmem [shape: f32[2,8,32], index: 4, kind: input, shape index: {}]   ;;  %s1645_s5 = inlined_call_operand.vmem [shape: f32[2,8,1], index: 5, kind: input, shape index: {}]   ;;  %s1646_s6 = inlined_call_operand.vmem [shape: bf16[2,32,128], index: 6, kind: input, shape index: {}]   ;;  %s1647_s7 = inlined_call_operand.vmem [shape: f32[2,128,160], index: 7, kind: input, shape index: {}]   ;;  %s1648_s8 = inlined_call_operand.vmem [shape: f32[2,1,128], index: 8, kind: input, shape index: {}]   ;;  %s1649_s9 = inlined_call_operand.vmem [shape: bf16[32,128], index: 9, kind: input, shape index: {}]   ;;  %s1650_s10 = inlined_call_operand.hbm [shape: f32[2,8,256], index: 10, kind: output, shape index: {}]  }
   0x1   :  { %1651 = sst [smem:[#allocation5_spill]] %s1640_s0 }
   0x2   :  { %1652 = sst [smem:[#allocation6_spill]] %s1645_s5 }
   0x3   :  { %15 = vsyncpa [#allocation3], 0 }
   0x4   :  { %17 = vsyncpa [#allocation3 + $0x1], 0  ;;  %s1391_s13 = smov 0   ;;  %s1393_s14 = smov 0  }
   0x5   :  { %s1395_s15 = smov 0   ;;  %s1397_s16 = smov 0  }
   0x6   :  { %s1399_s17 = smov 0   ;;  %s1401_s18 = smov 0  }
   0x7 LB: > { %s1090_s19 = sadd.s32 4294967295, %s1326_s18   ;;  %s1091_s20 = sadd.s32 4294967294, %s1326_s18   ;;  %s1326_s18 = sphi %s1401_s18, %s23_s18   ;;  %s1322_s17 = sphi %s1399_s17, %s1661_s17   ;;  %s1318_s16 = sphi %s1397_s16, %s1660_s16   ;;  %s1314_s15 = sphi %s1395_s15, %s1659_s15   ;;  %s1310_s14 = sphi %s1393_s14, %s1658_s14   ;;  %s1306_s13 = sphi %s1391_s13, %s1657_s13  }
   0x8   : > { %s35_s21 = sadd.s32 1, %s1322_s17  ;;  %s311_s22 = sadd.s32 1, %s1314_s15 }
   0x9   : > { %p37_p0 = scmp.ge.s32.totalorder %s35_s21, 2  ;;  %p321_p1 = scmp.ne.s32.totalorder %s1314_s15, %s1310_s14 }
   0xa   : > { %p322_p2 = scmp.eq.s32.totalorder %s1090_s19, 1  ;;  %p327_p3 = scmp.ne.s32.totalorder %s1310_s14, %s1306_s13 }
   0xb   : > { %s1663_s21 = smov (%p37_p0, %s35_s21), 0  ;;  %p328_p5 = scmp.eq.s32.totalorder %s1091_s20, 1 }
   0xc   : > { %p1431_p4 = por %p322_p2, %p321_p1  ;;  %s306_s24 = ssub.s32 %s1322_s17, %s1663_s21 }
   0xd   : > { %p1094_p6 = scmp.ge.s32.totalorder %s1326_s18, 1  ;;  %p309_p7 = scmp.eq.s32.totalorder %s306_s24, 0 }
   0xe   : > { %p1438_p8 = por %p328_p5, %p327_p3  ;;  %p431_p9 = scmp.lt.s32.totalorder %s1326_s18, 3 }
   0xf   : > { %s1444_s26 = scalar_select %p309_p7, %s1314_s15, %s311_s22  }
  0x10   : > { %p432_p10 = pnand %p1094_p6, %p431_p9 }
  0x11   : > { %p519_p11 = scmp.lt.s32.totalorder (!%p432_p10), %s1318_s16, 1  ;;  %s1655_s0 = sld [smem:[#allocation5_spill]] (!%p432_p10)  ;;  %vm615_vm0 = vcmask (!%p432_p10), 261120   ;;  %v1328_v3 = vmov (!%p432_p10), 0.0   ;;  %vm1329_vm1 = vmmov (!%p432_p10), 0   ;;  %v1330_v11 = vmov (!%p432_p10), 0  }
  0x12   : > { %435 = sbr.rel (%p432_p10) target bundleno = 1408 (0x580), region = 60  ;;  %1130 = vmatprep.subr.bf16.mxu0 (!%p432_p10), %v1328_v3  ;;  %1134 = vmatprep.mubr.msk.bf16.mxu0 (!%p432_p10), %vm1329_vm1, %v1328_v3  ;;  %v680_v12 = vlaneseq (!%p432_p10)  ;;  %s1656_s5 = sld [smem:[#allocation6_spill]] (!%p432_p10)  ;;  %vm863_vm9 = vcmask (!%p432_p10), 523520   ;;  %vm871_vm10 = vcmask (!%p432_p10), 785920   ;;  %vm890_vm11 = vcmask (!%p432_p10), 1047808  }
  0x13   : > { %776 = vmatprep.mubr.f32.mxu1 (!%p432_p10), %v1328_v3  ;;  %1240 = vset.pattern.permute.xlu0 (!%p432_p10), %v1330_v11  ;;  %vm879_vm12 = vcmask (!%p432_p10), 1048320  }
  0x14   : > { %1241 = vset.pattern.permute.xlu1 (!%p432_p10), %v1330_v11  ;;  %v681_v14 = vshrl.u32 (!%p432_p10), %v680_v12, 7  ;;  %v1484_v24 = vand.u32 (!%p432_p10), 127, %v680_v12 }
  0x16   : > { %v682_v15 = vsub.s32 (!%p432_p10), 0, %v681_v14 }
  0x19   : > { %s1448_s27 = scalar_select %p519_p11, %s1318_s16, 1 }
  0x1b   : > { %s1451_s28 = sshll.u32 %s1448_s27, 3  ;;  %s1121_s12 = sshll.u32 %s1448_s27, 4 }
  0x1c   : > { %s525_s11 = scalar_lea.vmem %s1655_s0, %s1451_s28  ;;  %s565_s22 = scalar_lea.vmem %s1646_s6, %s1121_s12 }
  0x1d   : > { %v1457_v0 = vld [vmem:[%s525_s11] sm:$0xff]  ;;  %v1243_v5 = vld [vmem:[%s565_s22 + $0x8] sm:$0xff]   ;;  %s573_s30 = scalar_lea.vmem %s1648_s8, %s1448_s27  ;;  %s560_s19 = scalar_lea.vmem %s1656_s5, %s1451_s28 }
  0x1e   : > { %v614_v1 = vmul.f32 %v1457_v0, %v1457_v0  ;;  %v1242_v4 = vld [vmem:[%s565_s22] sm:$0xff]   ;;  %s1122_s20 = sshll.u32 %s1448_s27, 8  ;;  %s532_s22 = scalar_lea.vmem %s1641_s1, %s1451_s28 }
  0x1f   : > { %1131 = vmatpush3.bf16.msra.mxu0 %v1242_v4  ;;  %v577_v13 = vld [vmem:[%s573_s30] sm:$0x1]  ;;  %s1502_s29 = scalar_lea.vmem %s1647_s7, %s1122_s20  ;;  %s539_s27 = scalar_lea.vmem %s1642_s2, %s1451_s28 }
  0x20   : > { %v616_v2 = vsel %vm615_vm0, %v614_v1, 0.0  ;;  %1132 = vmatprep.subr.bf16.mxu0 %v1328_v3  ;;  %vm678_vm2 = vcmp.gt.f32.partialorder %v577_v13, 0.0  ;;  %v576_v23 = vld [vmem:[%s560_s19] sm:$0xff]  ;;  %v579_v32 = vld [vmem:[%s1502_s29 + $0x8] sm:$0xff]  ;;  %v581_v33 = vld [vmem:[%s1502_s29 + $0x18] sm:$0xff]  ;;  %s1332_s30 = smov 32   ;;  %s546_s20 = scalar_lea.vmem %s1643_s3, %s1451_s28 }
  0x21   : > { %617 = vadd.xlane.f32.xlu0 %v616_v2  ;;  %v679_v16 = vsel %vm678_vm2, 1, %v1330_v11  ;;  %v578_v34 = vld [vmem:[%s1502_s29] sm:$0xff]  ;;  %v1146_v35 = vpack.c.bf16 %v581_v33, %v579_v32  ;;  %v580_v36 = vld [vmem:[%s1502_s29 + $0x10] sm:$0xff]  ;;  %v583_v37 = vld [vmem:[%s1502_s29 + $0x28] sm:$0xff]  ;;  %s1333_s0 = smov 64   ;;  %s516_s5 = sand.u32 1, %s1310_s14  }
  0x22   : > { %v683_v17 = vrot.slane %v679_v16, %v682_v15  ;;  %v585_v38 = vld [vmem:[%s1502_s29 + $0x38] sm:$0xff]  ;;  %v1148_v39 = vpack.c.bf16 %v580_v36, %v578_v34  ;;  %v582_v41 = vld [vmem:[%s1502_s29 + $0x20] sm:$0xff]  ;;  %v584_v42 = vld [vmem:[%s1502_s29 + $0x30] sm:$0xff]  ;;  %s1095_s11 = sshll.u32 %s516_s5, 4  ;;  %s893_s19 = scalar_lea.sflag [#allocation3], %s516_s5 }
  0x23   : > { %1133 = vmatpush3.bf16.msra.mxu0 %v1243_v5  ;;  %v1150_v40 = vpack.c.bf16 %v585_v38, %v583_v37  ;;  %v587_v43 = vld [vmem:[%s1502_s29 + $0x48] sm:$0xff]  ;;  %1147 = vmatprep.subr.bf16.mxu1 %v1146_v35  ;;  %v589_v44 = vld [vmem:[%s1502_s29 + $0x58] sm:$0xff]  ;;  %v1152_v45 = vpack.c.bf16 %v584_v42, %v582_v41  ;;  %v586_v47 = vld [vmem:[%s1502_s29 + $0x40] sm:$0xff]  ;;  %s1563_s12 = scalar_lea.vmem [#allocation2], %s1095_s11 }
  0x24   : > { %1138 = vmatprep.subr.bf16.mxu0 %v1328_v3  ;;  %vm684_vm3 = vcmp.eq.s32.totalorder %v683_v17, 1  ;;  %1149 = vmatpush1.bf16.msra.mxu1 %v1148_v39  ;;  %v1154_v46 = vpack.c.bf16 %v589_v44, %v587_v43  ;;  %v588_v48 = vld [vmem:[%s1502_s29 + $0x50] sm:$0xff]  ;;  %v591_v49 = vld [vmem:[%s1502_s29 + $0x68] sm:$0xff]  ;;  %v593_v50 = vld [vmem:[%s1502_s29 + $0x78] sm:$0xff]  ;;  %s909_s11 = sshll.u32 %s1563_s12, 4  ;;  %s1589_s11 = int_to_ptr.vmem [resolvable:$true] %s909_s11 }
  0x25   : > { %1151 = vmatprep.subr.bf16.mxu1 %v1150_v40  ;;  %v1156_v51 = vpack.c.bf16 %v588_v48, %v586_v47  ;;  %v1158_v52 = vpack.c.bf16 %v593_v50, %v591_v49  ;;  %v590_v53 = vld [vmem:[%s1502_s29 + $0x60] sm:$0xff]  ;;  %v592_v54 = vld [vmem:[%s1502_s29 + $0x70] sm:$0xff]  ;;  %v595_v55 = vld [vmem:[%s1502_s29 + $0x88] sm:$0xff] }
  0x26   : > { %v597_v56 = vld [vmem:[%s1502_s29 + $0x98] sm:$0xff]  ;;  %v1160_v57 = vpack.c.bf16 %v592_v54, %v590_v53  ;;  %v594_v59 = vld [vmem:[%s1502_s29 + $0x80] sm:$0xff]  ;;  %v596_v60 = vld [vmem:[%s1502_s29 + $0x90] sm:$0xff] }
  0x27   : > { %v1162_v58 = vpack.c.bf16 %v597_v56, %v595_v55  ;;  %v599_v61 = vld [vmem:[%s1502_s29 + $0xa8] sm:$0xff]  ;;  %v601_v62 = vld [vmem:[%s1502_s29 + $0xb8] sm:$0xff]  ;;  %v1164_v63 = vpack.c.bf16 %v596_v60, %v594_v59  ;;  %v598_v2 = vld [vmem:[%s1502_s29 + $0xa0] sm:$0xff] }
  0x28   : > { %1153 = vmatpush1.bf16.msra.mxu1 %v1152_v45  ;;  %v1166_v1 = vpack.c.bf16 %v601_v62, %v599_v61  ;;  %v600_v4 = vld [vmem:[%s1502_s29 + $0xb0] sm:$0xff]  ;;  %v603_v5 = vld [vmem:[%s1502_s29 + $0xc8] sm:$0xff]  ;;  %v609_v17 = vld [vmem:[%s1502_s29 + $0xf8] sm:$0xff] }
  0x29   : > { %1155 = vmatprep.subr.bf16.mxu1 %v1154_v46  ;;  %v607_v16 = vld [vmem:[%s1502_s29 + $0xe8] sm:$0xff]  ;;  %v873_v40 = vld [vmem:[%s546_s20] sm:$0xff]  ;;  %s1248_s20 = scalar_lea.vmem %s1589_s11, 256 }
  0x2a   : > { %p1249_p12 = scmp.ne.s32.totalorder %s1589_s11, %s1248_s20 }
  0x2c   : > { %1157 = vmatpush1.bf16.msra.mxu1 %v1156_v51  ;;  %p1250_p13 = pnand %p1249_p12, %p1431_p4 }
  0x2d   : > { %1159 = vmatprep.subr.bf16.mxu1 %v1158_v52 }
  0x2e   : > { %p1251_p0 = pneg %p1250_p13 }
  0x30   : > { %1161 = vmatpush1.bf16.msra.mxu1 %v1160_v57 }
  0x31   : > { %1163 = vmatprep.subr.bf16.mxu1 %v1162_v58 }
  0x34   : > { %1165 = vmatpush1.bf16.msra.mxu1 %v1164_v63 }
  0x35   : > { %1167 = vmatprep.subr.bf16.mxu1 %v1166_v1 }
  0xae   : > { %v618_v6 = vpop.xlane.xlu0 %617 }
  0xaf   : > { %v619_v7 = vadd.f32 1e-06, %v618_v6  ;;  %v605_v6 = vld [vmem:[%s1502_s29 + $0xd8] sm:$0xff] }
  0xb1   : > { %1246 = vrsqrt.f32 %v619_v7  ;;  %v1168_v7 = vpack.c.bf16 %v600_v4, %v598_v2 }
  0xb3   : > { %1169 = vmatpush1.bf16.msra.mxu1 %v1168_v7 }
  0xbb   : > { %v1247_v8 = vpop.eup %1246 }
  0xbc   : > { %v621_v9 = vmul.f32 %v1247_v8, %v1457_v0  ;;  %v1170_v8 = vpack.c.bf16 %v605_v6, %v603_v5 }
  0xbe   : > { %v622_v10 = vpack.c.bf16 %v621_v9, %v621_v9  ;;  %v602_v9 = vld [vmem:[%s1502_s29 + $0xc0] sm:$0xff]  ;;  %1171 = vmatprep.subr.bf16.mxu1 %v1170_v8 }
  0xc0   : > { %1135 = vmatmul.mubr.msk.bf16.vlgmr.msra.gmra.mrb[0].mxu0 %vm615_vm0, %v622_v10  ;;  %v604_v10 = vld [vmem:[%s1502_s29 + $0xd0] sm:$0xff] }
  0xc1   : > { %1142 = vmatprep.mubr.msk.bf16.mxu0 %vm1329_vm1, %v1328_v3 }
 0x193   : > { %v672_v18 = vpop.f32.mrb[0].mxu0 }
 0x194   : > { %v1136_v19 = vpop.f32.mrb[1].mxu0  ;;  %v685_v20 = vsel %vm684_vm3, %v672_v18, -1e+09  ;;  %v1174_v18 = vpack.c.bf16 %v609_v17, %v607_v16 }
 0x195   : > { %686 = vmax.xlane.f32.xlu0 %v685_v20  ;;  %v675_v21 = vpop.f32.mrb[2].mxu0  ;;  %v606_v19 = vld [vmem:[%s1502_s29 + $0xe0] sm:$0xff] }
 0x196   : > { %v1137_v22 = vpop.f32.mrb[3].mxu0 }
 0x222   : > { %v687_v25 = vpop.xlane.xlu0 %686 }
 0x223   : > { %vm690_vm4 = vcmp.ge.f32.partialorder %v685_v20, %v687_v25  ;;  %v706_v26 = vsub.f32 %v687_v25, %v576_v23  ;;  %v608_v20 = vld [vmem:[%s1502_s29 + $0xf0] sm:$0xff]  ;;  %v1244_v23 = vld [vmem:[%s1649_s9] sm:$0xff]  }
 0x224   : > { %v1487_v27 = vsel %vm690_vm4, %v1484_v24, 128  ;;  %v1176_v21 = vpack.c.bf16 %v608_v20, %v606_v19  ;;  %1139 = vmatpush3.bf16.msra.mxu0 %v1244_v23 }
 0x225   : > { %v1489_v28 = vadd.f32 -0.2, %v706_v26  ;;  %v693_v29 = vshra.s32 %v1487_v27, 16  ;;  %v692_v12 = vand.u32 65535, %v1487_v27  ;;  %1140 = vmatprep.subr.bf16.mxu0 %v1328_v3 }
 0x227   : > { %vm708_vm5 = vcmp.gt.f32.partialorder %v1489_v28, 0.0  ;;  %v1493_v30 = vcvt.s32.f32 %v693_v29  ;;  %v694_v14 = vcvt.s32.f32 %v692_v12  ;;  %v1331_v28 = vmov 1.0  }
 0x228   : > { %v850_v31 = vsel %vm708_vm5, 1, %v1330_v11  ;;  %v1172_v11 = vpack.c.bf16 %v604_v10, %v602_v9  ;;  %v1115_v22 = vsel %vm708_vm5, 1.0, %v1328_v3  ;;  %v857_v3 = vld [vmem:[%s532_s22] sm:$0xff]  ;;  %s1334_s22 = smov 96  }
 0x229   : > { %852 = vperm.xlu0 %1240, %v850_v31   ;;  %696 = vmin.xlane.f32.xlu1 %v1493_v30  ;;  %v1245_v31 = vld [vmem:[%s1649_s9 + $0x8] sm:$0xff]  }
 0x22a   : > { %1173 = vmatpush1.bf16.msra.mxu1 %v1172_v11  ;;  %1141 = vmatpush3.bf16.msra.mxu0 %v1245_v31 }
 0x22b   : > { %1175 = vmatprep.subr.bf16.mxu1 %v1174_v18 }
 0x22e   : > { %1177 = vmatpush1.bf16.msra.mxu1 %v1176_v21 }
 0x2a8   : > { %v853_v32 = vpop.permute.xlu0 %852 }
 0x2a9   : > { %vm854_vm8 = vcmp.eq.s32.totalorder %v853_v32, 1 }
 0x2b6   : > { %v697_v13 = vpop.xlane.xlu1 %696 }
 0x2b7   : > { %vm698_vm6 = vcmp.eq.f32.partialorder %v1493_v30, %v697_v13  ;;  %v703_v25 = vcvt.f32.s32 %v697_v13 }
 0x2b8   : > { %v699_v15 = vsel %vm698_vm6, %v694_v14, inf }
 0x2b9   : > { %700 = vmin.xlane.f32.xlu1 %v699_v15  ;;  %v704_v27 = vshll.u32 %v703_v25, 16 }
 0x2ca   : > { %887 = vperm.xlu1 %1241, %v1115_v22  }
 0x2ce   : > { %859 = vrot.lane.b32.xlu1 %v857_v3, %s1332_s30 }
 0x346   : > { %v701_v26 = vpop.xlane.xlu1 %700 }
 0x347   : > { %v702_v29 = vcvt.f32.s32 %v701_v26 }
 0x349   : > { %v705_v30 = vadd.s32 %v704_v27, %v702_v29 }
 0x34a   : > { %v888_v42 = vpop.permute.xlu1 %887 }
 0x34b   : > { %vm709_vm7 = vcmp.eq.s32.totalorder %v1484_v24, %v705_v30  ;;  %v865_v24 = vld [vmem:[%s539_s27] sm:$0xff]  ;;  %s553_s27 = scalar_lea.vmem %s1644_s4, %s1451_s28 }
 0x34c   : > { %1111 = vmatmul.mubr.msk.f32.vlgmr.msra.gmra.mrb[0].mxu1 %vm709_vm7, %v1331_v28  ;;  %867 = vrot.lane.b32.xlu1 %v865_v24, %s1333_s0  ;;  %v881_v45 = vld [vmem:[%s553_s27] sm:$0xff] }
 0x34e   : > { %v860_v43 = vpop.permute.xlu1 %859 }
 0x3be   : > { %v868_v44 = vpop.permute.xlu1 %867 }
 0x41f   : > { %v778_v33 = vpop.f32.mrb[0].mxu1 }
 0x420   : > { %v783_v34 = vsub.f32 %v1457_v0, %v778_v33  ;;  %v855_v35 = vsel %vm854_vm8, %v778_v33, %v1457_v0  ;;  %v780_v36 = vpop.f32.mrb[1].mxu1 }
 0x421   : > { %856 = vst.msk [vmem:[%s1563_s12] sm:$0xff] %vm615_vm0, %v855_v35 }
 0x422   : > { %v784_v37 = vpack.c.bf16 %v783_v34, %v783_v34 }
 0x424   : > { %1143 = vmatmul.mubr.msk.bf16.vlgmr.msra.gmra.mrb[4].mxu0 %vm615_vm0, %v784_v37 }
 0x4f7   : > { %v838_v38 = vpop.f32.mrb[4].mxu0 }
 0x4f8   : > { %845 = vrot.lane.b32.xlu1 %v838_v38, %s1332_s30  ;;  %v1144_v39 = vpop.f32.mrb[5].mxu0  ;;  %s1123_s30 = sshll.u32 %s1318_s16, 8 }
 0x4f9   : > { %v841_v0 = vpop.f32.mrb[6].mxu0  ;;  %s1587_s16 = scalar_lea.hbm %s1650_s10, %s1123_s30 }
 0x4fa   : > { %v1145_v41 = vpop.f32.mrb[7].mxu0 }
 0x4fc   : > { %875 = vrot.lane.b32.xlu1 %v873_v40, %s1334_s22  ;;  %s1335_s22 = smov [#allocation2]  }
 0x4fd   : > { %s1252_s24 = sshll.u32 %s1335_s22, 4  ;;  %s1253_s24 = int_to_ptr.vmem [resolvable:$false] %s1252_s24 }
 0x4fe   : > { %s1254_s29 = scalar_lea.vmem %s1253_s24, 512  ;;  %p1255_p1 = scmp.lt.s32.totalorder %s1589_s11, %s1253_s24 }
 0x4ff   : > { %p1256_p2 = scmp.lt.s32.totalorder %s1254_s29, %s1248_s20 }
 0x501   : > { %p1257_p3 = por %p1256_p2, %p1255_p1 }
 0x503   : > { %p1258_p5 = pnand %p1257_p3, %p1251_p0 }
 0x56a   : > { %v846_v46 = vpop.permute.xlu1 %845 }
 0x56b   : > { %v848_v47 = vadd.f32 %v846_v46, %v778_v33  ;;  %v849_v48 = vadd.f32 %v846_v46, %v780_v36 }
 0x56d   : > { %v862_v49 = vsel %vm854_vm8, %v848_v47, %v860_v43  ;;  %v870_v50 = vsel %vm854_vm8, %v848_v47, %v868_v44  ;;  %v882_v51 = vsel %vm854_vm8, %v849_v48, %v881_v45 }
 0x56e   : > { %864 = vst.msk [vmem:[%s1563_s12] sm:$0xff] %vm863_vm9, %v862_v49  ;;  %v876_v52 = vpop.permute.xlu1 %875 }
 0x56f   : > { %883 = vst.msk [vmem:[%s1563_s12 + $0x8] sm:$0xff] %vm615_vm0, %v882_v51  ;;  %v878_v53 = vsel %vm854_vm8, %v848_v47, %v876_v52 }
 0x570   : > { %872 = vst.msk [vmem:[%s1563_s12] sm:$0xff] %vm871_vm10, %v870_v50 }
 0x571   : > { %891 = vst.msk [vmem:[%s1563_s12 + $0x8] sm:$0xff] %vm890_vm11, %v888_v42 }
 0x572   : > { %880 = vst.msk [vmem:[%s1563_s12] sm:$0xff] %vm879_vm12, %v878_v53 }
 0x573   : > { %1261 = shalt.err (!%p1258_p5)
}
 0x574   : > { %s1262_s5 = scalar_lea.hbm %s1587_s16, 256  ;;  %s1266_s30 = scalar_lea.hbm %s1650_s10, 512 }
 0x575   : > { %p1263_p6 = scmp.ne.s32.totalorder %s1587_s16, %s1262_s5  ;;  %p1267_p10 = scmp.lt.u32.totalorder %s1587_s16, %s1650_s10 }
 0x576   : > { %p1268_p11 = scmp.lt.u32.totalorder %s1266_s30, %s1262_s5  ;;  %p1270_p13 = scmp.lt.u32.totalorder %s1262_s5, %s1587_s16 }
 0x577   : > { %p1264_p7 = pnand %p1263_p6, %p1431_p4 }
 0x578   : > { %p1269_p12 = por %p1268_p11, %p1267_p10 }
 0x579   : > { %p1265_p9 = pneg %p1264_p7 }
 0x57a   : > { %p1271_p0 = por %p1270_p13, %p1269_p12 }
 0x57c   : > { %p1272_p1 = pnand %p1271_p0, %p1265_p9 }
 0x57e   : > { %1275 = shalt.err (!%p1272_p1)
}
 0x57f   : > { %1178 = dma.vmem_to_hbm [thread:$0]  (%p1431_p4), %s1589_s11, 256, %s1587_s16, %s893_s19  }
 0x580 PF: > { %p1184_p2 = scmp.ge.s32.totalorder %s1326_s18, 2  ;;  %s921_s20 = sand.u32 1, %s1306_s13  }
 0x581   : > { %s922_s22 = scalar_lea.sflag [#allocation3], %s921_s20 }
 0x582   : > { %p1181_p3 = pnand %p1184_p2, %p1438_p8 }
 0x584   : > { %1301 = dma.done.wait (!%p1181_p3), %s922_s22, 256  }
 0x585   : > { %1303 = vsyncadd (!%p1181_p3), %s922_s22, 4294967040  ;;  %s23_s18 = sadd.s32 1, %s1326_s18   ;;  %s1657_s13 = smov %s1310_s14 }
 0x586   : > { %p20_p5 = scmp.ge.s32.totalorder %s23_s18, 4   ;;  %s1658_s14 = smov %s1314_s15 }
 0x587   : > { %s1659_s15 = smov %s1444_s26  ;;  %s1660_s16 = smov %s1322_s17 }
 0x588   : > { %s1661_s17 = smov %s1663_s21  ;;  %22 = sbr.rel (!%p20_p5) target bundleno = 7 (0x7), region = 119 }
 0x58f   :  { %927 = vsyncpa [#allocation3], 1 }
 0x590   :  { %929 = vsyncpa [#allocation3 + $0x1], 1 }

</bundles_post_ra>
